<compile_context>
chip_gen: v7x
topology: tpu7x:2x2x1
jax: 0.10.0
libtpu: 0.0.40
codegen_flags: <defaults>
</compile_context>

<pallas_src>
import functools

import jax
import jax.numpy as jnp
from jax import lax
from jax.experimental import pallas as pl
from jax.experimental.pallas import tpu as pltpu


def _round_up(x: int, mult: int) -> int:
    return ((x + mult - 1) // mult) * mult


def _vmem_capacity_bytes() -> int:
    """Physical VMEM of the local TPU; conservative fallback if query fails."""
    try:
        return int(pltpu.get_tpu_info().vmem_capacity_bytes)
    except Exception:
        return 64 * 1024 * 1024  # v7x per-core VMEM (smallest of v5e/v6e/v7x)


def _triplet_kernel(a_ref, p_ref, n_ref, o_ref, *, m):
    # Upcast to f32 (no-op for f32 inputs; avoids bf16 accumulation loss and
    # awkward packed lowering on v5e, where the VPU/EUP have no bf16 path).
    a = a_ref[...].astype(jnp.float32)
    p = p_ref[...].astype(jnp.float32)
    n = n_ref[...].astype(jnp.float32)

    diff_close = a - p
    diff_depart = a - n
    sq_close = diff_close * diff_close      # (TILE_B, D)
    sq_depart = diff_depart * diff_depart   # (TILE_B, D)

    # Row-sum over the feature axis on the MXU: contract the last dims of
    # ones(1, D) and sq(TILE_B, D)  ->  (1, TILE_B), lane-dense along batch.
    ones_row = jnp.ones((1, a.shape[1]), dtype=jnp.float32)
    contract_last = (((1,), (1,)), ((), ()))
    loss_close = lax.dot_general(ones_row, sq_close, contract_last,
                                 preferred_element_type=jnp.float32)
    loss_depart = lax.dot_general(ones_row, sq_depart, contract_last,
                                  preferred_element_type=jnp.float32)

    # factor = 1 - loss_depart / (loss_close + m); divide pushed to the EUP.
    inv = pl.reciprocal(loss_close + m, approx=True)
    factor = 1.0 - loss_depart * inv
    o_ref[...] = jnp.maximum(factor, 0.0).astype(o_ref.dtype)


def esm_triplet_loss(anchor, positive, negative, m=0.01):
    """Pallas TPU implementation of ESMTripletLoss.forward.

    anchor, positive, negative: (B, D) float arrays.
    Returns: (B,) per-sample loss, same semantics as the PyTorch module.
    """
    B, D = anchor.shape
    itemsize = jnp.dtype(anchor.dtype).itemsize

    # --- tile sizing against VMEM ------------------------------------------
    vmem_cap = _vmem_capacity_bytes()
    vmem_limit = min(int(vmem_cap * 0.7), 64 * 1024 * 1024)
    vmem_limit = max(vmem_limit, 32 * 1024 * 1024)

    # 3 input streams x 2 pipeline buffers per grid step; use ~half the scoped
    # budget for the pipelined tiles, leave the rest for elementwise temporaries.
    tile_budget = vmem_limit // 2
    bytes_per_row = 3 * 2 * D * itemsize
    tile_b = tile_budget // max(bytes_per_row, 1)
    tile_b = (tile_b // 128) * 128
    tile_b = max(128, min(tile_b, 2048))
    tile_b = min(tile_b, _round_up(B, 128))   # don't over-pad tiny batches

    # --- pad batch so it divides evenly into tiles --------------------------
    b_pad = _round_up(B, tile_b)
    if b_pad != B:
        pad = ((0, b_pad - B), (0, 0))
        anchor = jnp.pad(anchor, pad)
        positive = jnp.pad(positive, pad)
        negative = jnp.pad(negative, pad)
    num_tiles = b_pad // tile_b

    kernel = functools.partial(_triplet_kernel, m=float(m))

    out = pl.pallas_call(
        kernel,
        out_shape=jax.ShapeDtypeStruct((1, b_pad), anchor.dtype),
        grid=(num_tiles,),
        in_specs=[
            pl.BlockSpec((tile_b, D), lambda i: (i, 0)),
            pl.BlockSpec((tile_b, D), lambda i: (i, 0)),
            pl.BlockSpec((tile_b, D), lambda i: (i, 0)),
        ],
        out_specs=pl.BlockSpec((1, tile_b), lambda i: (0, i)),
        compiler_params=pltpu.CompilerParams(
            dimension_semantics=("parallel",),
            vmem_limit_bytes=vmem_limit,
        ),
    )(anchor, positive, negative)

    return out[0, :B]


def _reference(anchor, positive, negative, m=0.01):
    diff_close = anchor - positive
    diff_depart = anchor - negative
    loss_close = jnp.sum(diff_close * diff_close, axis=1)
    loss_depart = jnp.sum(diff_depart * diff_depart, axis=1)
    factor = 1.0 - loss_depart / (loss_close + m)
    return jnp.maximum(jnp.zeros_like(factor), factor)


if __name__ == "__main__":
    key = jax.random.PRNGKey(0)
    k_a, k_p, k_n = jax.random.split(key, 3)

    B, D = 8, 32
    anchor = jax.random.normal(k_a, (B, D), dtype=jnp.float32)
    positive = jax.random.normal(k_p, (B, D), dtype=jnp.float32)
    negative = jax.random.normal(k_n, (B, D), dtype=jnp.float32)

    loss = esm_triplet_loss(anchor, positive, negative, m=0.01)
    loss = jax.block_until_ready(loss)

    ref = _reference(anchor, positive, negative, m=0.01)
    assert loss.shape == (B,)
    # Slightly loosened tolerance: approx EUP reciprocal + MXU reduction order.
    assert jnp.allclose(loss, ref, atol=5e-3, rtol=5e-3), (loss, ref)

    print("KERNEL_OK")
</pallas_src>

<mosaic_0001>
module attributes {stable_mosaic.version = 11 : i64} {
  func.func @_triplet_kernel(%arg0: i32, %arg1: memref<128x32xf32, #tpu.memory_space<vmem>>, %arg2: memref<128x32xf32, #tpu.memory_space<vmem>>, %arg3: memref<128x32xf32, #tpu.memory_space<vmem>>, %arg4: memref<1x128xf32, #tpu.memory_space<vmem>>) attributes {dimension_semantics = [#tpu.dimension_semantics<parallel>], iteration_bounds = array<i64: 1>, scalar_prefetch = 0 : i64, scratch_operands = 0 : i64, tpu.core_type = #tpu.core_type<tc>, window_params = [{transform_indices = @transform_0, window_bounds = array<i64: 128, 32>}, {transform_indices = @transform_1, window_bounds = array<i64: 128, 32>}, {transform_indices = @transform_2, window_bounds = array<i64: 128, 32>}, {transform_indices = @transform_3, window_bounds = array<i64: 1, 128>}]} {
    %c0 = arith.constant 0 : index
    %c0_0 = arith.constant 0 : index
    %0 = vector.load %arg1[%c0, %c0_0] : memref<128x32xf32, #tpu.memory_space<vmem>>, vector<128x32xf32>
    %c0_1 = arith.constant 0 : index
    %c0_2 = arith.constant 0 : index
    %1 = vector.load %arg2[%c0_1, %c0_2] : memref<128x32xf32, #tpu.memory_space<vmem>>, vector<128x32xf32>
    %c0_3 = arith.constant 0 : index
    %c0_4 = arith.constant 0 : index
    %2 = vector.load %arg3[%c0_3, %c0_4] : memref<128x32xf32, #tpu.memory_space<vmem>>, vector<128x32xf32>
    %3 = arith.subf %0, %1 : vector<128x32xf32>
    %4 = arith.subf %0, %2 : vector<128x32xf32>
    %5 = arith.mulf %3, %3 : vector<128x32xf32>
    %6 = arith.mulf %4, %4 : vector<128x32xf32>
    %cst = arith.constant 1.000000e+00 : f32
    %7 = vector.broadcast %cst : f32 to vector<1x32xf32>
    %cst_5 = arith.constant dense<0.000000e+00> : vector<1x128xf32>
    %8 = tpu.matmul %7, %5, %cst_5 {dimension_numbers = #tpu.dot_dimension_numbers<[1], [1], [0], [0], [0, 0, 1, 0], [], []>} : vector<1x32xf32>, vector<128x32xf32>, vector<1x128xf32> -> vector<1x128xf32>
    %cst_6 = arith.constant dense<0.000000e+00> : vector<1x128xf32>
    %9 = tpu.matmul %7, %6, %cst_6 {dimension_numbers = #tpu.dot_dimension_numbers<[1], [1], [0], [0], [0, 0, 1, 0], [], []>} : vector<1x32xf32>, vector<128x32xf32>, vector<1x128xf32> -> vector<1x128xf32>
    %cst_7 = arith.constant 0.00999999977 : f32
    %10 = vector.broadcast %cst_7 : f32 to vector<1x128xf32>
    %11 = arith.addf %8, %10 : vector<1x128xf32>
    %12 = tpu.reciprocal %11 {approx = true} : vector<1x128xf32> -> vector<1x128xf32>
    %13 = arith.mulf %9, %12 : vector<1x128xf32>
    %cst_8 = arith.constant 1.000000e+00 : f32
    %14 = vector.broadcast %cst_8 : f32 to vector<1x128xf32>
    %15 = arith.subf %14, %13 : vector<1x128xf32>
    %cst_9 = arith.constant 0.000000e+00 : f32
    %16 = vector.broadcast %cst_9 : f32 to vector<1x128xf32>
    %17 = arith.maximumf %15, %16 : vector<1x128xf32>
    %c0_10 = arith.constant 0 : index
    %c0_11 = arith.constant 0 : index
    %18 = vector.load %arg4[%c0_10, %c0_11] : memref<1x128xf32, #tpu.memory_space<vmem>>, vector<1x128xf32>
    tpu.vector_store %arg4[%c0_10, %c0_11], %17 {strides = array<i32>} : memref<1x128xf32, #tpu.memory_space<vmem>>, vector<1x128xf32>,
    return
  }
  func.func @transform_0(%arg0: i32) -> (i32, i32) {
    %c0_i32 = arith.constant 0 : i32
    %c0_i32_0 = arith.constant 0 : i32
    return %arg0, %c0_i32 : i32, i32
  }
  func.func @transform_1(%arg0: i32) -> (i32, i32) {
    %c0_i32 = arith.constant 0 : i32
    %c0_i32_0 = arith.constant 0 : i32
    return %arg0, %c0_i32 : i32, i32
  }
  func.func @transform_2(%arg0: i32) -> (i32, i32) {
    %c0_i32 = arith.constant 0 : i32
    %c0_i32_0 = arith.constant 0 : i32
    return %arg0, %c0_i32 : i32, i32
  }
  func.func @transform_3(%arg0: i32) -> (i32, i32) {
    %c0_i32 = arith.constant 0 : i32
    %c0_i32_0 = arith.constant 0 : i32
    return %c0_i32, %arg0 : i32, i32
  }
}

</mosaic_0001>

<bundles_post_ra>
// kernel: tpu_custom_call.1
= control target key start
LH: loop header
LB: loop body
LE: loop exit
PB: predicated region body
PF: predicated region fallthrough
CT: control target
= control target key end

     0   :  { %v619_v3 = vmov 0.0|0.0   ;;  %vm127_vm0 = vcmask 261120   ;;  %vm620_vm1 = vmmov 0   ;;  %v621_v11 = vmov 0.0   ;;  %s856_s0 = inlined_call_operand.vmem [shape: f32[128,32], index: 0, kind: input, shape index: {}]   ;;  %s857_s1 = inlined_call_operand.vmem [shape: f32[128,32], index: 1, kind: input, shape index: {}]   ;;  %s858_s2 = inlined_call_operand.vmem [shape: f32[128,32], index: 2, kind: input, shape index: {}]   ;;  %s859_s3 = inlined_call_operand.hbm [shape: f32[1,128], index: 3, kind: output, shape index: {}]  }
   0x1   :  { %v15_v0 = vld [vmem:[%s856_s0] sm:$0xff]  ;;  %v16_v1 = vld [vmem:[%s856_s0 + $0x8] sm:$0xff]  ;;  %556 = vmatprep.subr.bf16.mxu1 %v619_v3  ;;  %v17_v6 = vld [vmem:[%s856_s0 + $0x10] sm:$0xff]  ;;  %524 = vmatprep.subr.bf16.mxu0 %v619_v3 }
   0x2   :  { %v31_v2 = vld [vmem:[%s857_s1] sm:$0xff]  ;;  %v32_v4 = vld [vmem:[%s857_s1 + $0x8] sm:$0xff]  ;;  %v18_v8 = vld [vmem:[%s856_s0 + $0x18] sm:$0xff]  ;;  %521 = vmatprep.mubr.msk.f32.mxu1 %vm620_vm1, %v621_v11  ;;  %486 = vmatprep.mubr.msk.f32.mxu0 %vm620_vm1, %v621_v11 }
   0x3   :  { %v63_v5 = vsub.f32 %v15_v0, %v31_v2  ;;  %v64_v7 = vsub.f32 %v16_v1, %v32_v4  ;;  %v33_v9 = vld [vmem:[%s857_s1 + $0x10] sm:$0xff]  ;;  %v34_v10 = vld [vmem:[%s857_s1 + $0x18] sm:$0xff]  ;;  %v47_v14 = vld [vmem:[%s858_s2] sm:$0xff] }
   0x4   :  { %v65_v13 = vsub.f32 %v17_v6, %v33_v9  ;;  %v48_v15 = vld [vmem:[%s858_s2 + $0x8] sm:$0xff]  ;;  %v66_v17 = vsub.f32 %v18_v8, %v34_v10  ;;  %v79_v18 = vsub.f32 %v15_v0, %v47_v14  ;;  %vm678_vm2 = vmpackc.low %vm127_vm0, %vm127_vm0  ;;  %v49_v21 = vld [vmem:[%s858_s2 + $0x10] sm:$0xff] }
   0x5   :  { %v95_v12 = vmul.f32 %v63_v5, %v63_v5  ;;  %v96_v16 = vmul.f32 %v64_v7, %v64_v7  ;;  %v80_v19 = vsub.f32 %v16_v1, %v48_v15  ;;  %v50_v22 = vld [vmem:[%s858_s2 + $0x18] sm:$0xff]  ;;  %v81_v26 = vsub.f32 %v17_v6, %v49_v21  ;;  %v19_v31 = vld [vmem:[%s856_s0 + $0x20] sm:$0xff]  ;;  %v20_v32 = vld [vmem:[%s856_s0 + $0x28] sm:$0xff] }
   0x6   :  { %v111_v24 = vmul.f32 %v79_v18, %v79_v18  ;;  %v82_v27 = vsub.f32 %v18_v8, %v50_v22  ;;  %v97_v28 = vmul.f32 %v65_v13, %v65_v13  ;;  %v98_v29 = vmul.f32 %v66_v17, %v66_v17  ;;  %v35_v33 = vld [vmem:[%s857_s1 + $0x20] sm:$0xff]  ;;  %v36_v34 = vld [vmem:[%s857_s1 + $0x28] sm:$0xff]  ;;  %v21_v47 = vld [vmem:[%s856_s0 + $0x30] sm:$0xff] }
   0x7   :  { %v557_v23 = vpack.c.bf16 %v96_v16, %v95_v12  ;;  %v112_v25 = vmul.f32 %v80_v19, %v80_v19  ;;  %v113_v35 = vmul.f32 %v81_v26, %v81_v26  ;;  %v51_v37 = vld [vmem:[%s858_s2 + $0x20] sm:$0xff]  ;;  %v52_v38 = vld [vmem:[%s858_s2 + $0x28] sm:$0xff]  ;;  %v67_v40 = vsub.f32 %v19_v31, %v35_v33 }
   0x8   :  { %v114_v36 = vmul.f32 %v82_v27, %v82_v27  ;;  %v561_v39 = vpack.c.bf16 %v98_v29, %v97_v28  ;;  %v68_v41 = vsub.f32 %v20_v32, %v36_v34  ;;  %v83_v43 = vsub.f32 %v19_v31, %v51_v37 }
   0x9   :  { %559 = vmatpush3.bf16.xpose.msk.msra.mxu1 %vm678_vm2, %v557_v23  ;;  %v525_v30 = vpack.c.bf16 %v112_v25, %v111_v24  ;;  %v84_v44 = vsub.f32 %v20_v32, %v52_v38  ;;  %v99_v45 = vmul.f32 %v67_v40, %v67_v40 }
   0xa   :  { %560 = vmatprep.subr.bf16.mxu1 %v619_v3  ;;  %v529_v42 = vpack.c.bf16 %v114_v36, %v113_v35  ;;  %v100_v46 = vmul.f32 %v68_v41, %v68_v41 }
   0xb   :  { %527 = vmatpush3.bf16.xpose.msk.msra.mxu0 %vm678_vm2, %v525_v30 }
   0xc   :  { %528 = vmatprep.subr.bf16.mxu0 %v619_v3 }
  0x11   :  { %563 = vmatpush3.bf16.xpose.msk.msra.mxu1 %vm678_vm2, %v561_v39 }
  0x12   :  { %8 = vsyncpa [#allocation3], 0  ;;  %564 = vmatprep.subr.bf16.mxu1 %v619_v3  ;;  %v22_v48 = vld [vmem:[%s856_s0 + $0x38] sm:$0xff]  ;;  %v37_v49 = vld [vmem:[%s857_s1 + $0x30] sm:$0xff]  ;;  %v115_v51 = vmul.f32 %v83_v43, %v83_v43  ;;  %v116_v52 = vmul.f32 %v84_v44, %v84_v44  ;;  %v565_v55 = vpack.c.bf16 %v100_v46, %v99_v45 }
  0x13   :  { %v38_v50 = vld [vmem:[%s857_s1 + $0x38] sm:$0xff]  ;;  %531 = vmatpush3.bf16.xpose.msk.msra.mxu0 %vm678_vm2, %v529_v42  ;;  %v53_v53 = vld [vmem:[%s858_s2 + $0x30] sm:$0xff]  ;;  %v69_v56 = vsub.f32 %v21_v47, %v37_v49  ;;  %v23_v63 = vld [vmem:[%s856_s0 + $0x40] sm:$0xff] }
  0x14   :  { %532 = vmatprep.subr.bf16.mxu0 %v619_v3  ;;  %v54_v54 = vld [vmem:[%s858_s2 + $0x38] sm:$0xff]  ;;  %v70_v57 = vsub.f32 %v22_v48, %v38_v50  ;;  %v533_v58 = vpack.c.bf16 %v116_v52, %v115_v51  ;;  %v85_v59 = vsub.f32 %v21_v47, %v53_v53  ;;  %v24_v0 = vld [vmem:[%s856_s0 + $0x48] sm:$0xff]  ;;  %v39_v1 = vld [vmem:[%s857_s1 + $0x40] sm:$0xff] }
  0x15   :  { %v86_v60 = vsub.f32 %v22_v48, %v54_v54  ;;  %v101_v61 = vmul.f32 %v69_v56, %v69_v56  ;;  %v40_v2 = vld [vmem:[%s857_s1 + $0x48] sm:$0xff]  ;;  %v55_v6 = vld [vmem:[%s858_s2 + $0x40] sm:$0xff]  ;;  %v71_v9 = vsub.f32 %v23_v63, %v39_v1  ;;  %v25_v16 = vld [vmem:[%s856_s0 + $0x50] sm:$0xff] }
  0x16   :  { %v102_v62 = vmul.f32 %v70_v57, %v70_v57  ;;  %v117_v4 = vmul.f32 %v85_v59, %v85_v59  ;;  %v56_v7 = vld [vmem:[%s858_s2 + $0x48] sm:$0xff]  ;;  %v72_v10 = vsub.f32 %v24_v0, %v40_v2  ;;  %v87_v12 = vsub.f32 %v23_v63, %v55_v6  ;;  %v26_v17 = vld [vmem:[%s856_s0 + $0x58] sm:$0xff]  ;;  %v41_v18 = vld [vmem:[%s857_s1 + $0x50] sm:$0xff] }
  0x17   :  { %v118_v5 = vmul.f32 %v86_v60, %v86_v60  ;;  %v88_v13 = vsub.f32 %v24_v0, %v56_v7  ;;  %v103_v14 = vmul.f32 %v71_v9, %v71_v9  ;;  %v42_v19 = vld [vmem:[%s857_s1 + $0x58] sm:$0xff]  ;;  %v57_v23 = vld [vmem:[%s858_s2 + $0x50] sm:$0xff]  ;;  %v73_v26 = vsub.f32 %v25_v16, %v41_v18  ;;  %v27_v33 = vld [vmem:[%s856_s0 + $0x60] sm:$0xff] }
  0x18   :  { %v569_v8 = vpack.c.bf16 %v102_v62, %v101_v61  ;;  %v104_v15 = vmul.f32 %v72_v10, %v72_v10  ;;  %v119_v21 = vmul.f32 %v87_v12, %v87_v12  ;;  %v58_v24 = vld [vmem:[%s858_s2 + $0x58] sm:$0xff]  ;;  %v74_v27 = vsub.f32 %v26_v17, %v42_v19  ;;  %v28_v34 = vld [vmem:[%s856_s0 + $0x68] sm:$0xff]  ;;  %v43_v35 = vld [vmem:[%s857_s1 + $0x60] sm:$0xff] }
  0x19   :  { %567 = vmatpush3.bf16.xpose.msk.msra.mxu1 %vm678_vm2, %v565_v55  ;;  %v537_v11 = vpack.c.bf16 %v118_v5, %v117_v4  ;;  %v120_v22 = vmul.f32 %v88_v13, %v88_v13  ;;  %v89_v29 = vsub.f32 %v25_v16, %v57_v23  ;;  %v90_v30 = vsub.f32 %v26_v17, %v58_v24  ;;  %v44_v36 = vld [vmem:[%s857_s1 + $0x68] sm:$0xff]  ;;  %v59_v39 = vld [vmem:[%s858_s2 + $0x60] sm:$0xff]  ;;  %v29_v49 = vld [vmem:[%s856_s0 + $0x70] sm:$0xff] }
  0x1a   :  { %568 = vmatprep.subr.bf16.mxu1 %v619_v3  ;;  %v573_v25 = vpack.c.bf16 %v104_v15, %v103_v14  ;;  %v105_v31 = vmul.f32 %v73_v26, %v73_v26  ;;  %v106_v32 = vmul.f32 %v74_v27, %v74_v27  ;;  %v60_v40 = vld [vmem:[%s858_s2 + $0x68] sm:$0xff]  ;;  %v75_v42 = vsub.f32 %v27_v33, %v43_v35  ;;  %v30_v50 = vld [vmem:[%s856_s0 + $0x78] sm:$0xff]  ;;  %v45_v51 = vld [vmem:[%s857_s1 + $0x70] sm:$0xff] }
  0x1b   :  { %535 = vmatpush3.bf16.xpose.msk.msra.mxu0 %vm678_vm2, %v533_v58  ;;  %v541_v28 = vpack.c.bf16 %v120_v22, %v119_v21  ;;  %v121_v37 = vmul.f32 %v89_v29, %v89_v29  ;;  %v122_v38 = vmul.f32 %v90_v30, %v90_v30  ;;  %v76_v43 = vsub.f32 %v28_v34, %v44_v36  ;;  %v46_v52 = vld [vmem:[%s857_s1 + $0x78] sm:$0xff]  ;;  %v61_v55 = vld [vmem:[%s858_s2 + $0x70] sm:$0xff]  ;;  %s623_s1 = smov [#allocation2]  }
  0x1c   :  { %536 = vmatprep.subr.bf16.mxu0 %v619_v3  ;;  %v577_v41 = vpack.c.bf16 %v106_v32, %v105_v31  ;;  %v91_v45 = vsub.f32 %v27_v33, %v59_v39  ;;  %v92_v46 = vsub.f32 %v28_v34, %v60_v40  ;;  %v107_v47 = vmul.f32 %v75_v42, %v75_v42  ;;  %v62_v56 = vld [vmem:[%s858_s2 + $0x78] sm:$0xff]  ;;  %s378_s2 = sshll.u32 %s623_s1, 4  ;;  %s379_s2 = int_to_ptr.vmem [resolvable:$true] %s378_s2 }
  0x1d   :  { %v545_v44 = vpack.c.bf16 %v122_v38, %v121_v37  ;;  %v108_v48 = vmul.f32 %v76_v43, %v76_v43  ;;  %v77_v58 = vsub.f32 %v29_v49, %v45_v51  ;;  %v78_v59 = vsub.f32 %v30_v50, %v46_v52  ;;  %s595_s26 = scalar_lea.vmem %s379_s2, 16  ;;  %s599_s27 = scalar_lea.vmem %s379_s2, 32 }
  0x1e   :  { %v123_v53 = vmul.f32 %v91_v45, %v91_v45  ;;  %v124_v54 = vmul.f32 %v92_v46, %v92_v46  ;;  %v93_v61 = vsub.f32 %v29_v49, %v61_v55  ;;  %v94_v62 = vsub.f32 %v30_v50, %v62_v56  ;;  %p596_p0 = scmp.ne.s32.totalorder %s379_s2, %s595_s26  ;;  %p600_p1 = scmp.lt.s32.totalorder %s379_s2, %s379_s2 }
  0x1f   :  { %v581_v57 = vpack.c.bf16 %v108_v48, %v107_v47  ;;  %v109_v63 = vmul.f32 %v77_v58, %v77_v58  ;;  %v110_v0 = vmul.f32 %v78_v59, %v78_v59  ;;  %v622_v6 = vmov 1.0   ;;  %p601_p2 = scmp.lt.s32.totalorder %s599_s27, %s595_s26 }
  0x20   :  { %v549_v60 = vpack.c.bf16 %v124_v54, %v123_v53  ;;  %v125_v1 = vmul.f32 %v93_v61, %v93_v61  ;;  %v126_v2 = vmul.f32 %v94_v62, %v94_v62 }
  0x21   :  { %571 = vmatpush3.bf16.xpose.msk.msra.mxu1 %vm678_vm2, %v569_v8  ;;  %v585_v4 = vpack.c.bf16 %v110_v0, %v109_v63  ;;  %p602_p3 = por %p601_p2, %p600_p1 }
  0x22   :  { %572 = vmatprep.subr.bf16.mxu1 %v619_v3  ;;  %v553_v5 = vpack.c.bf16 %v126_v2, %v125_v1 }
  0x23   :  { %539 = vmatpush3.bf16.xpose.msk.msra.mxu0 %vm678_vm2, %v537_v11  ;;  %p603_p4 = pnand %p602_p3, %p596_p0 }
  0x24   :  { %540 = vmatprep.subr.bf16.mxu0 %v619_v3 }
  0x29   :  { %575 = vmatpush3.bf16.xpose.msk.msra.mxu1 %vm678_vm2, %v573_v25 }
  0x2a   :  { %576 = vmatprep.subr.bf16.mxu1 %v619_v3 }
  0x2b   :  { %543 = vmatpush3.bf16.xpose.msk.msra.mxu0 %vm678_vm2, %v541_v28 }
  0x2c   :  { %544 = vmatprep.subr.bf16.mxu0 %v619_v3 }
  0x31   :  { %579 = vmatpush3.bf16.xpose.msk.msra.mxu1 %vm678_vm2, %v577_v41 }
  0x32   :  { %580 = vmatprep.subr.bf16.mxu1 %v619_v3 }
  0x33   :  { %547 = vmatpush3.bf16.xpose.msk.msra.mxu0 %vm678_vm2, %v545_v44 }
  0x34   :  { %548 = vmatprep.subr.bf16.mxu0 %v619_v3 }
  0x39   :  { %583 = vmatpush3.bf16.xpose.msk.msra.mxu1 %vm678_vm2, %v581_v57 }
  0x3a   :  { %584 = vmatprep.subr.bf16.mxu1 %v619_v3 }
  0x3b   :  { %551 = vmatpush3.bf16.xpose.msk.msra.mxu0 %vm678_vm2, %v549_v60 }
  0x3c   :  { %552 = vmatprep.subr.bf16.mxu0 %v619_v3 }
  0x41   :  { %587 = vmatpush3.bf16.xpose.msk.msra.mxu1 %vm678_vm2, %v585_v4 }
  0x43   :  { %555 = vmatpush3.bf16.xpose.msk.msra.mxu0 %vm678_vm2, %v553_v5 }
  0x48   :  { %522 = vmatmul.mubr.msk.f32.vlgmr.msra.gmra.mrb[0].mxu1 %vm127_vm0, %v622_v6 }
  0x4a   :  { %487 = vmatmul.mubr.msk.f32.vlgmr.msra.gmra.mrb[0].mxu0 %vm127_vm0, %v622_v6 }
 0x11b   :  { %v363_v7 = vpop.f32.mrb[0].mxu1 }
 0x11c   :  { %v364_v8 = vadd.f32 0.01, %v363_v7  ;;  %v523_v9 = vpop.f32.mrb[1].mxu1 }
 0x11d   :  { %v245_v10 = vpop.f32.mrb[0].mxu0 }
 0x11e   :  { %593 = vrcp.f32 %v364_v8  ;;  %v488_v11 = vpop.f32.mrb[1].mxu0 }
 0x128   :  { %v594_v3 = vpop.eup %593 }
 0x129   :  { %v368_v12 = vmul.f32 %v594_v3, %v245_v10 }
 0x12b   :  { %v369_v13 = vsub.f32 1.0, %v368_v12 }
 0x12d   :  { %v370_v14 = vmax.f32 %v369_v13, 0.0 }
 0x12f   :  { %371 = vst [vmem:[#allocation2] sm:$0x1] %v370_v14 }
 0x130   :  { %606 = shalt.err (!%p603_p4)
}
 0x131   :  { %s607_s30 = scalar_lea.hbm %s859_s3, 16 }
 0x132   :  { %p608_p5 = scmp.ne.s32.totalorder %s859_s3, %s607_s30  ;;  %p611_p6 = scmp.lt.u32.totalorder %s607_s30, %s859_s3 }
 0x134   :  { %p613_p7 = pnand %p611_p6, %p608_p5 }
 0x136   :  { %616 = shalt.err (!%p613_p7)
}
 0x137   :  { %381 = dma.vmem_to_hbm [thread:$0]  %s379_s2, 16, %s859_s3, [#allocation3]  }
 0x138   :  { %617 = dma.done.wait [#allocation3], 16  }
 0x139   :  { %618 = vsyncadd [#allocation3], 4294967280 }
 0x13a   :  { %385 = vsyncpa [#allocation3], 1 }

</bundles_post_ra>
